<compile_context>
chip_gen: v6e
topology: v6e:2x2x1
jax: 0.10.0
libtpu: 0.0.40
codegen_flags: <defaults>
</compile_context>

<pallas_src>
import jax
import jax.numpy as jnp
from jax.experimental import pallas as pl
from jax.experimental.pallas import tpu as pltpu

# ---------------- config (stands in for cmd_args) ----------------
FEAT_DIM   = 4     # cmd_args.feat_dim
LATENT_DIM = 32    # cmd_args.latent_dim
OUT_DIM    = 0     # cmd_args.out_dim == 0 -> embed dim = latent_dim
HIDDEN     = 32    # cmd_args.hidden
NUM_CLASS  = 2     # cmd_args.num_class
MAX_LV     = 2     # cmd_args.max_lv

N_GRAPHS        = 16
NODES_PER_GRAPH = 8
G_PER_STEP      = 8                                  # graphs per grid step
N_STEPS         = N_GRAPHS // G_PER_STEP             # grid extent (2 -> both v7x TCs)
CHUNK_NODES     = G_PER_STEP * NODES_PER_GRAPH       # 64 rows per stacked matmul
OUT_LANES       = 128                                # lane-dense output row per graph

assert N_GRAPHS % G_PER_STEP == 0


# ---------------- packed constant slab layout ----------------
def _align8(x):
    return (x + 7) // 8 * 8

R_POOL  = 0                                  # (G_PER_STEP, CHUNK_NODES) graph sum-pool
R_WN2L  = _align8(R_POOL + G_PER_STEP)       # (FEAT_DIM, LATENT_DIM)
R_BN2L  = _align8(R_WN2L + FEAT_DIM)         # (1, LATENT_DIM)
R_CONVW = _align8(R_BN2L + 1)                # (LATENT_DIM, LATENT_DIM)
R_CONVB = _align8(R_CONVW + LATENT_DIM)      # (1, LATENT_DIM)
R_H1W   = _align8(R_CONVB + 1)               # (LATENT_DIM, HIDDEN)
R_H1B   = _align8(R_H1W + LATENT_DIM)        # (1, HIDDEN)
R_H2W   = _align8(R_H1B + 1)                 # (HIDDEN, NUM_CLASS)
R_H2B   = _align8(R_H2W + HIDDEN)            # (1, NUM_CLASS)
SLAB_ROWS = _align8(R_H2B + 1)               # 144
SLAB_COLS = 128


def pack_weight_slab(params):
    """Concatenate every constant operand into one lane-padded f32 slab."""
    slab = jnp.zeros((SLAB_ROWS, SLAB_COLS), jnp.float32)
    # graph sum-pooling matrix: row g has ones over that graph's node rows
    pool = jnp.repeat(jnp.eye(G_PER_STEP, dtype=jnp.float32),
                      NODES_PER_GRAPH, axis=1)                      # (8, 64)
    slab = slab.at[R_POOL:R_POOL + G_PER_STEP, :CHUNK_NODES].set(pool)
    slab = slab.at[R_WN2L:R_WN2L + FEAT_DIM, :LATENT_DIM].set(params["w_n2l"])
    slab = slab.at[R_BN2L, :LATENT_DIM].set(params["b_n2l"][0])
    slab = slab.at[R_CONVW:R_CONVW + LATENT_DIM, :LATENT_DIM].set(params["conv_w"])
    slab = slab.at[R_CONVB, :LATENT_DIM].set(params["conv_b"][0])
    slab = slab.at[R_H1W:R_H1W + LATENT_DIM, :HIDDEN].set(params["h1_w"])
    slab = slab.at[R_H1B, :HIDDEN].set(params["h1_b"][0])
    slab = slab.at[R_H2W:R_H2W + HIDDEN, :NUM_CLASS].set(params["h2_w"])
    slab = slab.at[R_H2B, :NUM_CLASS].set(params["h2_b"][0])
    return slab


# ---------------- fused Pallas kernel (one chunk of graphs per grid step) ----
def classifier_kernel(feat_ref, adj_ref, lbl_ref, slab_ref, out_ref):
    slab = slab_ref[...]                                            # (144, 128) f32
    pool   = slab[R_POOL:R_POOL + G_PER_STEP, :CHUNK_NODES]         # (8, 64)
    w_n2l  = slab[R_WN2L:R_WN2L + FEAT_DIM, :LATENT_DIM]            # (4, 32)
    b_n2l  = slab[R_BN2L:R_BN2L + 1, :LATENT_DIM]                   # (1, 32)
    conv_w = slab[R_CONVW:R_CONVW + LATENT_DIM, :LATENT_DIM]        # (32, 32)
    conv_b = slab[R_CONVB:R_CONVB + 1, :LATENT_DIM]                 # (1, 32)
    h1_w   = slab[R_H1W:R_H1W + LATENT_DIM, :HIDDEN]                # (32, 32)
    h1_b   = slab[R_H1B:R_H1B + 1, :HIDDEN]                         # (1, 32)
    h2_w   = slab[R_H2W:R_H2W + HIDDEN, :NUM_CLASS]                 # (32, 2)
    h2_b   = slab[R_H2B:R_H2B + 1, :NUM_CLASS]                      # (1, 2)

    feat = feat_ref[...]                                            # (64, 4)
    adj  = adj_ref[...]                                             # (64, 64) block-diag 0/1

    # --- EmbedMeanField (out_dim == 0 path), stacked over the chunk's graphs ---
    input_message = (jnp.dot(feat, w_n2l, preferred_element_type=jnp.float32)
                     + b_n2l)                                       # (64, 32)
    cur = jnp.maximum(input_message, 0.0)
    msg_plus_b = input_message + conv_b            # conv bias folded once, outside unroll
    for _ in range(MAX_LV):                        # static unroll, MAX_LV small
        n2npool = jnp.dot(adj, cur, preferred_element_type=jnp.float32)
        lin = jnp.dot(n2npool, conv_w, preferred_element_type=jnp.float32)
        cur = jnp.maximum(lin + msg_plus_b, 0.0)
    # graph-level sum pooling == constant 0/1 matmul (block-diag subg spmm)
    embed = jnp.maximum(jnp.dot(pool, cur, preferred_element_type=jnp.float32),
                        0.0)                                        # (8, 32)

    # --- MLPClassifier: Linear -> ReLU -> Linear -> log_softmax ---
    # TODO(synk): dropout (with_dropout=cmd_args.dropout) not implemented.
    h = jnp.maximum(jnp.dot(embed, h1_w, preferred_element_type=jnp.float32)
                    + h1_b, 0.0)                                    # (8, 32)
    logits = (jnp.dot(h, h2_w, preferred_element_type=jnp.float32)
              + h2_b)                                               # (8, 2)
    m = jnp.max(logits, axis=-1, keepdims=True)
    lse = m + jnp.log(jnp.sum(jnp.exp(logits - m), axis=-1, keepdims=True))
    logp = logits - lse                                             # (8, 2)

    # --- NLL / accuracy epilogue (vectorized one-hot, no gather) ---
    lbl = lbl_ref[...]                                              # (8, 1) int32
    cls = jax.lax.broadcasted_iota(jnp.int32, (G_PER_STEP, NUM_CLASS), 1)
    onehot = (cls == lbl).astype(jnp.float32)
    nll = -jnp.sum(logp * onehot, axis=-1, keepdims=True)           # (8, 1)
    maxv = jnp.max(logp, axis=-1, keepdims=True)
    pred = jnp.min(jnp.where(logp >= maxv, cls, NUM_CLASS),
                   axis=-1, keepdims=True)                          # first argmax
    correct = (pred == lbl).astype(jnp.float32)                     # (8, 1)

    # --- sublane+lane-dense (8,128) output block:
    #     per-graph row = [logp_0..logp_{C-1}, nll, correct, 0 pad] ---
    lane = jax.lax.broadcasted_iota(jnp.int32, (G_PER_STEP, OUT_LANES), 1)
    row = jnp.where(lane == NUM_CLASS, nll,
                    jnp.where(lane == NUM_CLASS + 1, correct, 0.0))
    for c in range(NUM_CLASS):                     # NUM_CLASS=2: two selects
        row = jnp.where(lane == c, logp[:, c:c + 1], row)
    out_ref[...] = row


# ---------------- wrapper ----------------
def classifier_forward(node_feat, adj, labels, params):
    """Fused forward. Returns (logprobs (G, C), loss scalar, acc scalar)."""
    n = NODES_PER_GRAPH

    # host-side layout (stand-in for PrepareFeatureLabel's concatenation):
    feat_flat = node_feat.reshape(N_GRAPHS * n, FEAT_DIM)           # (128, 4)
    adj_bd = jnp.zeros((N_STEPS, CHUNK_NODES, CHUNK_NODES), jnp.float32)
    for s in range(N_STEPS):
        for g in range(G_PER_STEP):
            adj_bd = adj_bd.at[s, g * n:(g + 1) * n, g * n:(g + 1) * n].set(
                adj[s * G_PER_STEP + g])
    adj_flat = adj_bd.reshape(N_STEPS * CHUNK_NODES, CHUNK_NODES)   # (128, 64)
    labels_col = labels.reshape(N_GRAPHS, 1).astype(jnp.int32)      # (16, 1)
    slab = pack_weight_slab(params)                                 # (144, 128)

    grid_spec = pltpu.PrefetchScalarGridSpec(
        num_scalar_prefetch=0,
        grid=(N_STEPS,),
        in_specs=[
            pl.BlockSpec((CHUNK_NODES, FEAT_DIM),    lambda s: (s, 0)),  # node feats
            pl.BlockSpec((CHUNK_NODES, CHUNK_NODES), lambda s: (s, 0)),  # block-diag adj
            pl.BlockSpec((G_PER_STEP, 1),            lambda s: (s, 0)),  # labels
            pl.BlockSpec((SLAB_ROWS, SLAB_COLS),     lambda s: (0, 0)),  # packed weights
        ],
        out_specs=pl.BlockSpec((G_PER_STEP, OUT_LANES), lambda s: (s, 0)),
    )

    flops_per_step = (
        2 * CHUNK_NODES * FEAT_DIM * LATENT_DIM
        + MAX_LV * (2 * CHUNK_NODES * CHUNK_NODES * LATENT_DIM
                    + 2 * CHUNK_NODES * LATENT_DIM * LATENT_DIM)
        + 2 * G_PER_STEP * CHUNK_NODES * LATENT_DIM
        + 2 * G_PER_STEP * LATENT_DIM * HIDDEN
        + 2 * G_PER_STEP * HIDDEN * NUM_CLASS)
    bytes_accessed = 4 * (feat_flat.size + adj_flat.size + labels_col.size
                          + slab.size + N_GRAPHS * OUT_LANES)
    cost = pl.CostEstimate(flops=N_STEPS * flops_per_step,
                           transcendentals=N_GRAPHS * (NUM_CLASS + 1),
                           bytes_accessed=bytes_accessed)

    out = pl.pallas_call(
        classifier_kernel,
        out_shape=jax.ShapeDtypeStruct((N_GRAPHS, OUT_LANES), jnp.float32),
        grid_spec=grid_spec,
        compiler_params=pltpu.CompilerParams(
            dimension_semantics=("parallel",)),   # v7x: chunks split across the 2 TCs
        cost_estimate=cost,
    )(feat_flat, adj_flat, labels_col, slab)

    logprobs = out[:, :NUM_CLASS]
    loss = jnp.mean(out[:, NUM_CLASS])            # mean of per-graph NLL
    acc = jnp.mean(out[:, NUM_CLASS + 1])         # mean of per-graph correct flags
    return logprobs, loss, acc


# ---------------- pure-JAX reference (for correctness check) ----------------
def reference_forward(node_feat, adj, labels, params):
    P = jax.lax.Precision.HIGHEST
    msg = jnp.einsum("gnf,fl->gnl", node_feat, params["w_n2l"],
                     precision=P) + params["b_n2l"]
    cur = jnp.maximum(msg, 0.0)
    for _ in range(MAX_LV):
        pooled = jnp.einsum("gij,gjl->gil", adj, cur, precision=P)
        lin = jnp.einsum("gnl,lm->gnm", pooled, params["conv_w"],
                         precision=P) + params["conv_b"]
        cur = jnp.maximum(lin + msg, 0.0)
    embed = jnp.maximum(jnp.sum(cur, axis=1), 0.0)
    h = jnp.maximum(jnp.dot(embed, params["h1_w"], precision=P) + params["h1_b"], 0.0)
    logits = jnp.dot(h, params["h2_w"], precision=P) + params["h2_b"]
    logp = jax.nn.log_softmax(logits, axis=-1)
    loss = -jnp.mean(logp[jnp.arange(N_GRAPHS), labels])
    acc = jnp.mean((jnp.argmax(logp, axis=1) == labels).astype(jnp.float32))
    return logp, loss, acc


# ---------------- deterministic setup ----------------
def init_params(key):
    ks = jax.random.split(key, 8)
    s = 0.1
    return {
        # EmbedMeanField params
        "w_n2l":  s * jax.random.normal(ks[0], (FEAT_DIM, LATENT_DIM), jnp.float32),
        "b_n2l":  s * jax.random.normal(ks[1], (1, LATENT_DIM), jnp.float32),
        "conv_w": s * jax.random.normal(ks[2], (LATENT_DIM, LATENT_DIM), jnp.float32),
        "conv_b": s * jax.random.normal(ks[3], (1, LATENT_DIM), jnp.float32),
        # MLPClassifier params
        "h1_w":   s * jax.random.normal(ks[4], (LATENT_DIM, HIDDEN), jnp.float32),
        "h1_b":   s * jax.random.normal(ks[5], (1, HIDDEN), jnp.float32),
        "h2_w":   s * jax.random.normal(ks[6], (HIDDEN, NUM_CLASS), jnp.float32),
        "h2_b":   s * jax.random.normal(ks[7], (1, NUM_CLASS), jnp.float32),
    }


def build_batch(key):
    """Host-side stand-in for PrepareFeatureLabel: per-graph dense node features,
    per-graph ring adjacency, and integer labels."""
    kf, kl = jax.random.split(key)
    node_feat = jax.random.normal(
        kf, (N_GRAPHS, NODES_PER_GRAPH, FEAT_DIM), jnp.float32)

    ring = jnp.zeros((NODES_PER_GRAPH, NODES_PER_GRAPH), jnp.float32)
    for i in range(NODES_PER_GRAPH):
        j = (i + 1) % NODES_PER_GRAPH
        ring = ring.at[i, j].set(1.0)
        ring = ring.at[j, i].set(1.0)
    adj = jnp.tile(ring[None], (N_GRAPHS, 1, 1))

    labels = jax.random.randint(kl, (N_GRAPHS,), 0, NUM_CLASS).astype(jnp.int32)
    return node_feat, adj, labels


if __name__ == "__main__":
    key = jax.random.PRNGKey(0)
    k_param, k_data = jax.random.split(key)
    params = init_params(k_param)
    node_feat, adj, labels = build_batch(k_data)

    logprobs, loss, acc = classifier_forward(node_feat, adj, labels, params)
    jax.block_until_ready((logprobs, loss, acc))

    assert logprobs.shape == (N_GRAPHS, NUM_CLASS)
    assert bool(jnp.all(jnp.isfinite(logprobs)))
    assert bool(jnp.isfinite(loss)) and bool(jnp.isfinite(acc))

    ref_logp, ref_loss, ref_acc = reference_forward(node_feat, adj, labels, params)
    assert bool(jnp.allclose(logprobs, ref_logp, atol=1e-3, rtol=1e-3))
    assert bool(jnp.allclose(loss, ref_loss, atol=1e-3, rtol=1e-3))
    assert bool(jnp.allclose(acc, ref_acc))

    print("KERNEL_OK")
</pallas_src>

<mosaic_0001>
module attributes {stable_mosaic.version = 11 : i64} {
  func.func @classifier_kernel(%arg0: i32, %arg1: memref<64x4xf32, #tpu.memory_space<vmem>>, %arg2: memref<64x64xf32, #tpu.memory_space<vmem>>, %arg3: memref<8x1xi32, #tpu.memory_space<vmem>>, %arg4: memref<144x128xf32, #tpu.memory_space<vmem>>, %arg5: memref<8x128xf32, #tpu.memory_space<vmem>>) attributes {dimension_semantics = [#tpu.dimension_semantics<parallel>], iteration_bounds = array<i64: 2>, scalar_prefetch = 0 : i64, scratch_operands = 0 : i64, tpu.core_type = #tpu.core_type<tc>, window_params = [{transform_indices = @transform_0, window_bounds = array<i64: 64, 4>}, {transform_indices = @transform_1, window_bounds = array<i64: 64, 64>}, {transform_indices = @transform_2, window_bounds = array<i64: 8, 1>}, {pipeline_mode = #tpu.pipeline_mode<synchronous>, transform_indices = @transform_3, window_bounds = array<i64: 144, 128>}, {transform_indices = @transform_4, window_bounds = array<i64: 8, 128>}]} {
    %c0 = arith.constant 0 : index
    %c0_0 = arith.constant 0 : index
    %0 = vector.load %arg4[%c0, %c0_0] : memref<144x128xf32, #tpu.memory_space<vmem>>, vector<144x128xf32>
    %1 = vector.extract_strided_slice %0 {offsets = [0, 0], sizes = [8, 64], strides = [1, 1]} : vector<144x128xf32> to vector<8x64xf32>
    %2 = vector.extract_strided_slice %0 {offsets = [8, 0], sizes = [4, 32], strides = [1, 1]} : vector<144x128xf32> to vector<4x32xf32>
    %3 = vector.extract_strided_slice %0 {offsets = [16, 0], sizes = [1, 32], strides = [1, 1]} : vector<144x128xf32> to vector<1x32xf32>
    %4 = vector.extract_strided_slice %0 {offsets = [24, 0], sizes = [32, 32], strides = [1, 1]} : vector<144x128xf32> to vector<32x32xf32>
    %5 = vector.extract_strided_slice %0 {offsets = [56, 0], sizes = [1, 32], strides = [1, 1]} : vector<144x128xf32> to vector<1x32xf32>
    %6 = vector.extract_strided_slice %0 {offsets = [64, 0], sizes = [32, 32], strides = [1, 1]} : vector<144x128xf32> to vector<32x32xf32>
    %7 = vector.extract_strided_slice %0 {offsets = [96, 0], sizes = [1, 32], strides = [1, 1]} : vector<144x128xf32> to vector<1x32xf32>
    %8 = vector.extract_strided_slice %0 {offsets = [104, 0], sizes = [32, 2], strides = [1, 1]} : vector<144x128xf32> to vector<32x2xf32>
    %9 = vector.extract_strided_slice %0 {offsets = [136, 0], sizes = [1, 2], strides = [1, 1]} : vector<144x128xf32> to vector<1x2xf32>
    %c0_1 = arith.constant 0 : index
    %c0_2 = arith.constant 0 : index
    %10 = vector.load %arg1[%c0_1, %c0_2] : memref<64x4xf32, #tpu.memory_space<vmem>>, vector<64x4xf32>
    %c0_3 = arith.constant 0 : index
    %c0_4 = arith.constant 0 : index
    %11 = vector.load %arg2[%c0_3, %c0_4] : memref<64x64xf32, #tpu.memory_space<vmem>>, vector<64x64xf32>
    %cst = arith.constant dense<0.000000e+00> : vector<64x32xf32>
    %12 = tpu.matmul %10, %2, %cst {dimension_numbers = #tpu.dot_dimension_numbers<[1], [0], [0], [1], [0, 0, 1, 1], [], []>} : vector<64x4xf32>, vector<4x32xf32>, vector<64x32xf32> -> vector<64x32xf32>
    %13 = vector.broadcast %3 : vector<1x32xf32> to vector<64x32xf32>
    %14 = arith.addf %12, %13 : vector<64x32xf32>
    %cst_5 = arith.constant 0.000000e+00 : f32
    %15 = vector.broadcast %cst_5 : f32 to vector<64x32xf32>
    %16 = arith.maximumf %14, %15 : vector<64x32xf32>
    %17 = vector.broadcast %5 : vector<1x32xf32> to vector<64x32xf32>
    %18 = arith.addf %14, %17 : vector<64x32xf32>
    %cst_6 = arith.constant dense<0.000000e+00> : vector<64x32xf32>
    %19 = tpu.matmul %11, %16, %cst_6 {dimension_numbers = #tpu.dot_dimension_numbers<[1], [0], [0], [1], [0, 0, 1, 1], [], []>} : vector<64x64xf32>, vector<64x32xf32>, vector<64x32xf32> -> vector<64x32xf32>
    %cst_7 = arith.constant dense<0.000000e+00> : vector<64x32xf32>
    %20 = tpu.matmul %19, %4, %cst_7 {dimension_numbers = #tpu.dot_dimension_numbers<[1], [0], [0], [1], [0, 0, 1, 1], [], []>} : vector<64x32xf32>, vector<32x32xf32>, vector<64x32xf32> -> vector<64x32xf32>
    %21 = arith.addf %20, %18 : vector<64x32xf32>
    %cst_8 = arith.constant 0.000000e+00 : f32
    %22 = vector.broadcast %cst_8 : f32 to vector<64x32xf32>
    %23 = arith.maximumf %21, %22 : vector<64x32xf32>
    %cst_9 = arith.constant dense<0.000000e+00> : vector<64x32xf32>
    %24 = tpu.matmul %11, %23, %cst_9 {dimension_numbers = #tpu.dot_dimension_numbers<[1], [0], [0], [1], [0, 0, 1, 1], [], []>} : vector<64x64xf32>, vector<64x32xf32>, vector<64x32xf32> -> vector<64x32xf32>
    %cst_10 = arith.constant dense<0.000000e+00> : vector<64x32xf32>
    %25 = tpu.matmul %24, %4, %cst_10 {dimension_numbers = #tpu.dot_dimension_numbers<[1], [0], [0], [1], [0, 0, 1, 1], [], []>} : vector<64x32xf32>, vector<32x32xf32>, vector<64x32xf32> -> vector<64x32xf32>
    %26 = arith.addf %25, %18 : vector<64x32xf32>
    %cst_11 = arith.constant 0.000000e+00 : f32
    %27 = vector.broadcast %cst_11 : f32 to vector<64x32xf32>
    %28 = arith.maximumf %26, %27 : vector<64x32xf32>
    %cst_12 = arith.constant dense<0.000000e+00> : vector<8x32xf32>
    %29 = tpu.matmul %1, %28, %cst_12 {dimension_numbers = #tpu.dot_dimension_numbers<[1], [0], [0], [1], [0, 0, 1, 1], [], []>} : vector<8x64xf32>, vector<64x32xf32>, vector<8x32xf32> -> vector<8x32xf32>
    %cst_13 = arith.constant 0.000000e+00 : f32
    %30 = vector.broadcast %cst_13 : f32 to vector<8x32xf32>
    %31 = arith.maximumf %29, %30 : vector<8x32xf32>
    %cst_14 = arith.constant dense<0.000000e+00> : vector<8x32xf32>
    %32 = tpu.matmul %31, %6, %cst_14 {dimension_numbers = #tpu.dot_dimension_numbers<[1], [0], [0], [1], [0, 0, 1, 1], [], []>} : vector<8x32xf32>, vector<32x32xf32>, vector<8x32xf32> -> vector<8x32xf32>
    %33 = vector.broadcast %7 : vector<1x32xf32> to vector<8x32xf32>
    %34 = arith.addf %32, %33 : vector<8x32xf32>
    %cst_15 = arith.constant 0.000000e+00 : f32
    %35 = vector.broadcast %cst_15 : f32 to vector<8x32xf32>
    %36 = arith.maximumf %34, %35 : vector<8x32xf32>
    %cst_16 = arith.constant dense<0.000000e+00> : vector<8x2xf32>
    %37 = tpu.matmul %36, %8, %cst_16 {dimension_numbers = #tpu.dot_dimension_numbers<[1], [0], [0], [1], [0, 0, 1, 1], [], []>} : vector<8x32xf32>, vector<32x2xf32>, vector<8x2xf32> -> vector<8x2xf32>
    %38 = vector.broadcast %9 : vector<1x2xf32> to vector<8x2xf32>
    %39 = arith.addf %37, %38 : vector<8x2xf32>
    %cst_17 = arith.constant dense<0xFF800000> : vector<8xf32>
    %40 = vector.multi_reduction <maximumf>, %39, %cst_17 [1] : vector<8x2xf32> to vector<8xf32>
    %41 = vector.shape_cast %40 : vector<8xf32> to vector<8x1xf32>
    %42 = vector.broadcast %41 : vector<8x1xf32> to vector<8x2xf32>
    %43 = arith.subf %39, %42 : vector<8x2xf32>
    %44 = math.exp %43 : vector<8x2xf32>
    %cst_18 = arith.constant dense<0.000000e+00> : vector<8xf32>
    %45 = vector.multi_reduction <add>, %44, %cst_18 [1] : vector<8x2xf32> to vector<8xf32>
    %46 = vector.shape_cast %45 : vector<8xf32> to vector<8x1xf32>
    %47 = math.log %46 : vector<8x1xf32>
    %48 = arith.addf %41, %47 : vector<8x1xf32>
    %49 = vector.broadcast %48 : vector<8x1xf32> to vector<8x2xf32>
    %50 = arith.subf %39, %49 : vector<8x2xf32>
    %c0_19 = arith.constant 0 : index
    %c0_20 = arith.constant 0 : index
    %51 = vector.load %arg3[%c0_19, %c0_20] : memref<8x1xi32, #tpu.memory_space<vmem>>, vector<8x1xi32>
    %52 = tpu.iota {dimensions = array<i32: 1>} : vector<8x2xi32>
    %53 = vector.broadcast %51 : vector<8x1xi32> to vector<8x2xi32>
    %54 = arith.cmpi eq, %52, %53 : vector<8x2xi32>
    %55 = arith.extui %54 : vector<8x2xi1> to vector<8x2xi32>
    %56 = arith.sitofp %55 : vector<8x2xi32> to vector<8x2xf32>
    %57 = arith.mulf %50, %56 : vector<8x2xf32>
    %cst_21 = arith.constant dense<0.000000e+00> : vector<8xf32>
    %58 = vector.multi_reduction <add>, %57, %cst_21 [1] : vector<8x2xf32> to vector<8xf32>
    %59 = vector.shape_cast %58 : vector<8xf32> to vector<8x1xf32>
    %cst_22 = arith.constant 0.000000e+00 : f32
    %60 = vector.broadcast %cst_22 : f32 to vector<8x1xf32>
    %61 = arith.subf %60, %59 : vector<8x1xf32>
    %cst_23 = arith.constant dense<0xFF800000> : vector<8xf32>
    %62 = vector.multi_reduction <maximumf>, %50, %cst_23 [1] : vector<8x2xf32> to vector<8xf32>
    %63 = vector.shape_cast %62 : vector<8xf32> to vector<8x1xf32>
    %64 = vector.broadcast %63 : vector<8x1xf32> to vector<8x2xf32>
    %65 = arith.cmpf oge, %50, %64 : vector<8x2xf32>
    %c2_i32 = arith.constant 2 : i32
    %66 = vector.broadcast %c2_i32 : i32 to vector<8x2xi32>
    %67 = arith.select %65, %52, %66 : vector<8x2xi1>, vector<8x2xi32>
    %cst_24 = arith.constant dense<2147483647> : vector<8xi32>
    %68 = vector.multi_reduction <minsi>, %67, %cst_24 [1] : vector<8x2xi32> to vector<8xi32>
    %69 = vector.shape_cast %68 : vector<8xi32> to vector<8x1xi32>
    %70 = arith.cmpi eq, %69, %51 : vector<8x1xi32>
    %71 = arith.extui %70 : vector<8x1xi1> to vector<8x1xi32>
    %72 = arith.sitofp %71 : vector<8x1xi32> to vector<8x1xf32>
    %73 = tpu.iota {dimensions = array<i32: 1>} : vector<8x128xi32>
    %c2_i32_25 = arith.constant 2 : i32
    %74 = vector.broadcast %c2_i32_25 : i32 to vector<8x128xi32>
    %75 = arith.cmpi eq, %73, %74 : vector<8x128xi32>
    %c3_i32 = arith.constant 3 : i32
    %76 = vector.broadcast %c3_i32 : i32 to vector<8x128xi32>
    %77 = arith.cmpi eq, %73, %76 : vector<8x128xi32>
    %cst_26 = arith.constant 0.000000e+00 : f32
    %78 = vector.shape_cast %72 : vector<8x1xf32> to vector<8x1xf32>
    %79 = vector.broadcast %78 : vector<8x1xf32> to vector<8x128xf32>
    %80 = vector.broadcast %cst_26 : f32 to vector<8x128xf32>
    %81 = arith.select %77, %79, %80 : vector<8x128xi1>, vector<8x128xf32>
    %82 = vector.shape_cast %61 : vector<8x1xf32> to vector<8x1xf32>
    %83 = vector.broadcast %82 : vector<8x1xf32> to vector<8x128xf32>
    %84 = arith.select %75, %83, %81 : vector<8x128xi1>, vector<8x128xf32>
    %c0_i32 = arith.constant 0 : i32
    %85 = vector.broadcast %c0_i32 : i32 to vector<8x128xi32>
    %86 = arith.cmpi eq, %73, %85 : vector<8x128xi32>
    %87 = vector.extract_strided_slice %50 {offsets = [0, 0], sizes = [8, 1], strides = [1, 1]} : vector<8x2xf32> to vector<8x1xf32>
    %88 = vector.shape_cast %87 : vector<8x1xf32> to vector<8x1xf32>
    %89 = vector.broadcast %88 : vector<8x1xf32> to vector<8x128xf32>
    %90 = arith.select %86, %89, %84 : vector<8x128xi1>, vector<8x128xf32>
    %c1_i32 = arith.constant 1 : i32
    %91 = vector.broadcast %c1_i32 : i32 to vector<8x128xi32>
    %92 = arith.cmpi eq, %73, %91 : vector<8x128xi32>
    %93 = vector.extract_strided_slice %50 {offsets = [0, 1], sizes = [8, 1], strides = [1, 1]} : vector<8x2xf32> to vector<8x1xf32>
    %94 = vector.shape_cast %93 : vector<8x1xf32> to vector<8x1xf32>
    %95 = vector.broadcast %94 : vector<8x1xf32> to vector<8x128xf32>
    %96 = arith.select %92, %95, %90 : vector<8x128xi1>, vector<8x128xf32>
    %c0_27 = arith.constant 0 : index
    %c0_28 = arith.constant 0 : index
    %97 = vector.load %arg5[%c0_27, %c0_28] : memref<8x128xf32, #tpu.memory_space<vmem>>, vector<8x128xf32>
    tpu.vector_store %arg5[%c0_27, %c0_28], %96 {strides = array<i32>} : memref<8x128xf32, #tpu.memory_space<vmem>>, vector<8x128xf32>,
    return
  }
  func.func @transform_0(%arg0: i32) -> (i32, i32) {
    %c0_i32 = arith.constant 0 : i32
    %c0_i32_0 = arith.constant 0 : i32
    return %arg0, %c0_i32 : i32, i32
  }
  func.func @transform_1(%arg0: i32) -> (i32, i32) {
    %c0_i32 = arith.constant 0 : i32
    %c0_i32_0 = arith.constant 0 : i32
    return %arg0, %c0_i32 : i32, i32
  }
  func.func @transform_2(%arg0: i32) -> (i32, i32) {
    %c0_i32 = arith.constant 0 : i32
    %c0_i32_0 = arith.constant 0 : i32
    return %arg0, %c0_i32 : i32, i32
  }
  func.func @transform_3(%arg0: i32) -> (i32, i32) {
    %c0_i32 = arith.constant 0 : i32
    %c0_i32_0 = arith.constant 0 : i32
    %c0_i32_1 = arith.constant 0 : i32
    return %c0_i32, %c0_i32_0 : i32, i32
  }
  func.func @transform_4(%arg0: i32) -> (i32, i32) {
    %c0_i32 = arith.constant 0 : i32
    %c0_i32_0 = arith.constant 0 : i32
    return %arg0, %c0_i32 : i32, i32
  }
}

</mosaic_0001>

<bundles_post_ra>
// kernel: tpu_custom_call.1
= control target key start
LH: loop header
LB: loop body
LE: loop exit
PB: predicated region body
PF: predicated region fallthrough
CT: control target
= control target key end

     0   :  { %9 = vsyncpa [#allocation3], 0  ;;  %s2135_s0 = inlined_call_operand.vmem [shape: f32[128,4], index: 0, kind: input, shape index: {}]   ;;  %s2136_s1 = inlined_call_operand.vmem [shape: f32[128,64], index: 1, kind: input, shape index: {}]   ;;  %s2137_s2 = inlined_call_operand.vmem [shape: s32[16,1], index: 2, kind: input, shape index: {}]   ;;  %s2138_s3 = inlined_call_operand.vmem [shape: f32[144,128], index: 3, kind: input, shape index: {}]   ;;  %s2139_s4 = inlined_call_operand.hbm [shape: f32[16,128], index: 4, kind: output, shape index: {}]  }
   0x1   :  { %11 = vsyncpa [#allocation3 + $0x1], 0  ;;  %s1777_s15 = smov 0   ;;  %s1779_s16 = smov 0  }
   0x2   :  { %s1781_s17 = smov 0   ;;  %s1783_s18 = smov 0  }
   0x3 LB: > { %s1798_s19 = sadd.s32 4294967295, %s1745_s18   ;;  %s1339_s20 = sadd.s32 4294967294, %s1745_s18   ;;  %s1745_s18 = sphi %s1783_s18, %s2145_s18   ;;  %s1741_s17 = sphi %s1781_s17, %s2144_s17   ;;  %s1737_s16 = sphi %s1779_s16, %s2143_s16   ;;  %s1733_s15 = sphi %s1777_s15, %s2142_s15  }
   0x4   : > { %s1802_s21 = sadd.s32 1, %s1745_s18   ;;  %s123_s22 = sadd.s32 1, %s1741_s17 }
   0x5   : > { %s120_s23 = ssub.s32 %s1745_s18, %s1802_s21  ;;  %p133_p0 = scmp.ne.s32.totalorder %s1741_s17, %s1737_s16 }
   0x6   : > { %p121_p1 = scmp.eq.s32.totalorder %s120_s23, 0  ;;  %p134_p2 = scmp.eq.s32.totalorder %s1798_s19, 1 }
   0x7   : > { %p139_p3 = scmp.ne.s32.totalorder %s1737_s16, %s1733_s15  ;;  %p140_p4 = scmp.eq.s32.totalorder %s1339_s20, 1 }
   0x8   : > { %s1813_s24 = scalar_select %p121_p1, %s1741_s17, %s123_s22  }
   0x9   : > { %p1815_p5 = por %p134_p2, %p133_p0  ;;  %p1819_p6 = por %p140_p4, %p139_p3 }
   0xa   : > { %p1342_p7 = scmp.ge.s32.totalorder %s1745_s18, 1  ;;  %p186_p8 = scmp.lt.s32.totalorder %s1745_s18, 3 }
   0xc   : > { %p187_p9 = pnand %p1342_p7, %p186_p8 }
   0xd   : > { %s1344_s29 = sshll.u32 (!%p187_p9), %s1798_s19, 3  ;;  %p233_p11 = scmp.lt.s32.totalorder (!%p187_p9), %s1798_s19, 1 }
   0xe   : > { %190 = sbr.rel (%p187_p9) target bundleno = 2566 (0xa06), region = 36  ;;  %p222_p10 = scmp.lt.s32.totalorder (!%p187_p9), %s1344_s29, 15 }
   0xf   : > { %s218_s22 = sand.u32 (!%p187_p9), 1, %s1737_s16   ;;  %s1396_s27 = sshll.u32 (!%p187_p9), %s1798_s19, 7 }
  0x10   : > { %s1343_s23 = sshll.u32 (!%p187_p9), %s218_s22, 3  ;;  %s2100_s6 = scalar_lea.hbm (!%p187_p9), %s2139_s4, %s1396_s27 }
  0x11   : > { %s220_s28 = scalar_lea.vmem (!%p187_p9), [#allocation2], %s1343_s23 }
  0x13   : > { %v238_v0 = vld [vmem:[%s2138_s3 + $0x8] sm:$0xff]  ;;  %vm300_vm0 = vcmask 1043456   ;;  %s2147_s29 = smov (!%p222_p10, %s1344_s29), 15  ;;  %vm275_vm1 = vcmask 31744   ;;  %vm429_vm2 = vcmask 523264   ;;  %v1853_v10 = vld [vmem:[%s2138_s3 + $0x30] sm:$0xff]  ;;  %v271_v13 = vlaneseq }
  0x14   : > { %1483 = vmatprep.subr.msk.mxu0 %vm300_vm0, %v238_v0  ;;  %s1345_s30 = sshll.u32 %s2147_s29, 3  ;;  %v1858_v11 = vld [vmem:[%s2138_s3 + $0x28] sm:$0xff]  ;;  %v1865_v12 = vld [vmem:[%s2138_s3 + $0x20] sm:$0xff]  ;;  %v239_v20 = vld [vmem:[%s2138_s3 + $0x10] sm:$0xff]  ;;  %vm559_vm3 = vcmask 261120   ;;  %vm1748_vm4 = vmmov 0  }
  0x15   : > { %1484 = vmatpush3.msk.msra.mxu0 %vm300_vm0, %v238_v0  ;;  %s225_s7 = scalar_lea.vmem %s2135_s0, %s1345_s30  ;;  %s1843_s10 = scalar_lea.vmem %s2136_s1, %s1345_s30  ;;  %v272_v16 = vshrl.u32 %v271_v13, 7  ;;  %v240_v49 = vld [vmem:[%s2138_s3 + $0x18] sm:$0xff]  ;;  %vm1168_vm5 = vcmask 15360  }
  0x16   : > { %v255_v1 = vld [vmem:[%s225_s7] sm:$0xff]  ;;  %v256_v2 = vld [vmem:[%s225_s7 + $0x8] sm:$0xff]  ;;  %v257_v3 = vld [vmem:[%s225_s7 + $0x10] sm:$0xff]  ;;  %1525 = vmatprep.subr.mxu0 %v1853_v10  ;;  %s234_s11 = scalar_select %p233_p11, %s1798_s19, 1 }
  0x17   : > { %1485 = vmatprep.mubr.msk.f32.mxu0 %vm275_vm1, %v255_v1  ;;  %v258_v4 = vld [vmem:[%s225_s7 + $0x18] sm:$0xff]  ;;  %v259_v5 = vld [vmem:[%s225_s7 + $0x20] sm:$0xff]  ;;  %v260_v6 = vld [vmem:[%s225_s7 + $0x28] sm:$0xff]  ;;  %v1872_v19 = vsub.s32 0, %v272_v16  ;;  %s1256_s29 = sshll.u32 %s220_s28, 4  ;;  %s1751_s19 = smov [#allocation2]   ;;  %s1257_s29 = int_to_ptr.vmem [resolvable:$true] %s1256_s29 }
  0x18   : > { %1486 = vmatmul.mubr.msk.f32.vlgmr.msra.gmra.mxu0 %vm275_vm1, %v256_v2  ;;  %v261_v7 = vld [vmem:[%s225_s7 + $0x30] sm:$0xff]  ;;  %v262_v8 = vld [vmem:[%s225_s7 + $0x38] sm:$0xff]  ;;  %v1846_v9 = vld [vmem:[%s1843_s10] sm:$0xff]  ;;  %s1348_s12 = sshll.u32 %s234_s11, 3  ;;  %s1243_s7 = scalar_lea.sflag [#allocation3], %s218_s22 }
  0x19   : > { %1488 = vmatprep.mubr.msk.f32.mxu0 %vm275_vm1, %v257_v3  ;;  %1513 = vmatprep.mubr.msk.f32.mxu1 %vm429_vm2, %v1846_v9  ;;  %v274_v23 = vrot.slane %v239_v20, %v1872_v19  ;;  %v1903_v42 = vld [vmem:[%s1843_s10 + $0x8] sm:$0xff]  ;;  %v1906_v43 = vld [vmem:[%s1843_s10 + $0x10] sm:$0xff]  ;;  %v1913_v44 = vld [vmem:[%s1843_s10 + $0x18] sm:$0xff]  ;;  %s236_s20 = scalar_lea.vmem %s2137_s2, %s1348_s12  ;;  %s1685_s8 = scalar_lea.vmem %s1257_s29, 128 }
  0x1a   : > { %1526 = vmatpush3.msra.mxu0 %v1853_v10  ;;  %v1916_v45 = vld [vmem:[%s1843_s10 + $0x20] sm:$0xff]  ;;  %v1923_v46 = vld [vmem:[%s1843_s10 + $0x28] sm:$0xff]  ;;  %v1926_v47 = vld [vmem:[%s1843_s10 + $0x30] sm:$0xff]  ;;  %p1686_p12 = scmp.ne.s32.totalorder %s1257_s29, %s1685_s8  ;;  %s1689_s9 = sshll.u32 %s1751_s19, 4  ;;  %s1690_s9 = int_to_ptr.vmem [resolvable:$false] %s1689_s9 }
  0x1b   : > { %1527 = vmatprep.subr.mxu0 %v1858_v11  ;;  %v1933_v48 = vld [vmem:[%s1843_s10 + $0x38] sm:$0xff]  ;;  %s1691_s10 = scalar_lea.vmem %s1690_s9, 256  ;;  %p1692_p1 = scmp.lt.s32.totalorder %s1257_s29, %s1690_s9 }
  0x1c   : > { %1489 = vmatmul.mubr.msk.f32.gmra.mxu0 %vm275_vm1, %v258_v4  ;;  %v244_v61 = vld [vmem:[%s2138_s3 + $0x38] sm:$0xff]  ;;  %p1687_p13 = pnand %p1686_p12, %p1815_p5  ;;  %p1693_p2 = scmp.lt.s32.totalorder %s1691_s10, %s1685_s8 }
  0x1d   : > { %1491 = vmatprep.mubr.msk.f32.mxu0 %vm275_vm1, %v259_v5  ;;  %1528 = vmatpush3.msra.mxu0 %v1858_v11  ;;  %v420_v0 = vrot.slane %v244_v61, %v1872_v19 }
  0x1e   : > { %1529 = vmatprep.subr.mxu0 %v1865_v12  ;;  %p1688_p0 = pneg %p1687_p13  ;;  %p1694_p3 = por %p1693_p2, %p1692_p1 }
  0x1f   : > { %1530 = vmatpush3.msra.mxu0 %v1865_v12 }
  0x20   : > { %1492 = vmatmul.mubr.msk.f32.gmra.mxu0 %vm275_vm1, %v260_v6  ;;  %1531 = vmatprep.subr.mxu0 %v240_v49  ;;  %p1695_p4 = pnand %p1694_p3, %p1688_p0 }
  0x21   : > { %1494 = vmatprep.mubr.msk.f32.mxu0 %vm275_vm1, %v261_v7  ;;  %1532 = vmatpush3.msra.mxu0 %v240_v49 }
  0x22   : > { %1573 = vmatprep.subr.mxu0 %v1853_v10 }
  0x24   : > { %1495 = vmatmul.mubr.msk.f32.gmra.mxu0 %vm275_vm1, %v262_v8 }
  0xd8   : > { %v1487_v14 = vpop.f32.mrf.mxu0 }
  0xd9   : > { %v1894_v36 = vadd.f32 %v1487_v14, %v274_v23 }
  0xda   : > { %v370_v15 = vpop.f32.mrf.mxu0 }
  0xdb   : > { %v1897_v38 = vadd.f32 %v370_v15, %v274_v23  ;;  %v410_v40 = vmax.f32 %v1894_v36, 0.0  ;;  %v1984_v20 = vadd.f32 %v420_v0, %v1894_v36 }
  0xdc   : > { %v1490_v17 = vpop.f32.mrf.mxu0 }
  0xdd   : > { %v1888_v32 = vadd.f32 %v1490_v17, %v274_v23  ;;  %v409_v41 = vmax.f32 %v1897_v38, 0.0 }
  0xde   : > { %v380_v18 = vpop.f32.mrf.mxu0 }
  0xdf   : > { %v1891_v34 = vadd.f32 %v380_v18, %v274_v23  ;;  %v412_v37 = vmax.f32 %v1888_v32, 0.0 }
  0xe0   : > { %v1493_v21 = vpop.f32.mrf.mxu0 }
  0xe1   : > { %v1880_v27 = vadd.f32 %v1493_v21, %v274_v23  ;;  %v411_v39 = vmax.f32 %v1891_v34, 0.0  ;;  %v1981_v17 = vadd.f32 %v420_v0, %v1891_v34 }
  0xe2   : > { %v390_v22 = vpop.f32.mrf.mxu0 }
  0xe3   : > { %v1885_v30 = vadd.f32 %v390_v22, %v274_v23  ;;  %v414_v33 = vmax.f32 %v1880_v27, 0.0  ;;  %v1964_v4 = vadd.f32 %v420_v0, %v1880_v27 }
  0xe4   : > { %v1496_v24 = vpop.f32.mrf.mxu0 }
  0xe5   : > { %v1878_v25 = vadd.f32 %v1496_v24, %v274_v23  ;;  %v413_v35 = vmax.f32 %v1885_v30, 0.0  ;;  %v1989_v24 = vadd.f32 %v420_v0, %v1897_v38  ;;  %v1747_v38 = vmov 0.0  }
  0xe6   : > { %v400_v26 = vpop.f32.mrf.mxu0 }
  0xe7   : > { %v1882_v28 = vadd.f32 %v400_v26, %v274_v23  ;;  %v416_v29 = vmax.f32 %v1878_v25, 0.0  ;;  %v1961_v2 = vadd.f32 %v420_v0, %v1878_v25 }
  0xe9   : > { %v415_v31 = vmax.f32 %v1882_v28, 0.0  ;;  %1497 = vmatprep.subr.mxu1 %v416_v29  ;;  %v1968_v6 = vadd.f32 %v420_v0, %v1882_v28 }
  0xea   : > { %1498 = vmatpush3.msra.mxu1 %v416_v29 }
  0xeb   : > { %1499 = vmatprep.subr.mxu1 %v415_v31 }
  0xec   : > { %1500 = vmatpush3.msra.mxu1 %v415_v31 }
  0xed   : > { %1501 = vmatprep.subr.mxu1 %v414_v33 }
  0xee   : > { %1502 = vmatpush3.msra.mxu1 %v414_v33 }
  0xef   : > { %1503 = vmatprep.subr.mxu1 %v413_v35 }
  0xf0   : > { %1504 = vmatpush3.msra.mxu1 %v413_v35 }
  0xf1   : > { %1505 = vmatprep.subr.mxu1 %v412_v37 }
  0xf2   : > { %1506 = vmatpush3.msra.mxu1 %v412_v37 }
  0xf3   : > { %1507 = vmatprep.subr.mxu1 %v411_v39 }
  0xf4   : > { %1508 = vmatpush3.msra.mxu1 %v411_v39  ;;  %v248_v39 = vld [vmem:[%s2138_s3 + $0x58] sm:$0xff] }
  0xf5   : > { %1509 = vmatprep.subr.mxu1 %v410_v40 }
  0xf6   : > { %1510 = vmatpush3.msra.mxu1 %v410_v40  ;;  %v247_v40 = vld [vmem:[%s2138_s3 + $0x50] sm:$0xff] }
  0xf7   : > { %1511 = vmatprep.subr.mxu1 %v409_v41 }
  0xf8   : > { %1512 = vmatpush3.msra.mxu1 %v409_v41  ;;  %v246_v41 = vld [vmem:[%s2138_s3 + $0x48] sm:$0xff] }
  0xf9   : > { %1514 = vmatmul.mubr.msk.f32.vlgmr.msra.gmra.mxu1 %vm429_vm2, %v1903_v42 }
  0xfa   : > { %1516 = vmatprep.mubr.msk.f32.mxu1 %vm429_vm2, %v1906_v43 }
  0xfd   : > { %1517 = vmatmul.mubr.msk.f32.gmra.mxu1 %vm429_vm2, %v1913_v44 }
  0xfe   : > { %1519 = vmatprep.mubr.msk.f32.mxu1 %vm429_vm2, %v1916_v45 }
 0x101   : > { %1520 = vmatmul.mubr.msk.f32.gmra.mxu1 %vm429_vm2, %v1923_v46 }
 0x102   : > { %1522 = vmatprep.mubr.msk.f32.mxu1 %vm429_vm2, %v1926_v47 }
 0x105   : > { %1523 = vmatmul.mubr.msk.f32.gmra.mxu1 %vm429_vm2, %v1933_v48 }
 0x106   : > { %1561 = vmatprep.mubr.msk.f32.mxu1 %vm429_vm2, %v1846_v9  ;;  %v1972_v9 = vadd.f32 %v420_v0, %v1885_v30 }
 0x1b9   : > { %v1515_v50 = vpop.f32.mrf.mxu1 }
 0x1bb   : > { %v520_v51 = vpop.f32.mrf.mxu1 }
 0x1bc   : > { %1533 = vmatprep.mubr.msk.f32.mxu0 %vm559_vm3, %v520_v51 }
 0x1bd   : > { %v1518_v52 = vpop.f32.mrf.mxu1  ;;  %1534 = vmatmul.mubr.msk.f32.vlgmr.msra.gmra.mxu0 %vm559_vm3, %v1515_v50 }
 0x1be   : > { %1574 = vmatpush3.msra.mxu0 %v1853_v10 }
 0x1bf   : > { %v530_v53 = vpop.f32.mrf.mxu1  ;;  %1575 = vmatprep.subr.mxu0 %v1858_v11 }
 0x1c0   : > { %1536 = vmatprep.mubr.msk.f32.mxu0 %vm559_vm3, %v530_v53  ;;  %1576 = vmatpush3.msra.mxu0 %v1858_v11 }
 0x1c1   : > { %v1521_v54 = vpop.f32.mrf.mxu1  ;;  %1537 = vmatmul.mubr.msk.f32.gmra.mxu0 %vm559_vm3, %v1518_v52  ;;  %1577 = vmatprep.subr.mxu0 %v1865_v12 }
 0x1c2   : > { %1578 = vmatpush3.msra.mxu0 %v1865_v12  ;;  %v1976_v12 = vadd.f32 %v420_v0, %v1888_v32 }
 0x1c3   : > { %v540_v55 = vpop.f32.mrf.mxu1  ;;  %1579 = vmatprep.subr.mxu0 %v240_v49 }
 0x1c4   : > { %1539 = vmatprep.mubr.msk.f32.mxu0 %vm559_vm3, %v540_v55  ;;  %1580 = vmatpush3.msra.mxu0 %v240_v49 }
 0x1c5   : > { %v1524_v56 = vpop.f32.mrf.mxu1  ;;  %1540 = vmatmul.mubr.msk.f32.gmra.mxu0 %vm559_vm3, %v1521_v54  ;;  %1612 = vmatprep.subr.mxu0 %v1747_v38 }
 0x1c7   : > { %v550_v57 = vpop.f32.mrf.mxu1 }
 0x1c8   : > { %1542 = vmatprep.mubr.msk.f32.mxu0 %vm559_vm3, %v550_v57 }
 0x1c9   : > { %1543 = vmatmul.mubr.msk.f32.gmra.mxu0 %vm559_vm3, %v1524_v56 }
 0x27d   : > { %v1535_v58 = vpop.f32.mrf.mxu0 }
 0x27e   : > { %v656_v23 = vadd.f32 %v1535_v58, %v1984_v20 }
 0x27f   : > { %v650_v59 = vpop.f32.mrf.mxu0 }
 0x280   : > { %v651_v26 = vadd.f32 %v650_v59, %v1989_v24  ;;  %v690_v28 = vmax.f32 %v656_v23, 0.0 }
 0x281   : > { %v1538_v60 = vpop.f32.mrf.mxu0 }
 0x282   : > { %v666_v16 = vadd.f32 %v1538_v60, %v1976_v12  ;;  %v689_v29 = vmax.f32 %v651_v26, 0.0 }
 0x283   : > { %v660_v62 = vpop.f32.mrf.mxu0 }
 0x284   : > { %v661_v21 = vadd.f32 %v660_v62, %v1981_v17  ;;  %v692_v25 = vmax.f32 %v666_v16, 0.0 }
 0x285   : > { %v1541_v63 = vpop.f32.mrf.mxu0 }
 0x286   : > { %v676_v8 = vadd.f32 %v1541_v63, %v1964_v4  ;;  %v691_v27 = vmax.f32 %v661_v21, 0.0 }
 0x287   : > { %v670_v1 = vpop.f32.mrf.mxu0 }
 0x288   : > { %v671_v14 = vadd.f32 %v670_v1, %v1972_v9  ;;  %v694_v18 = vmax.f32 %v676_v8, 0.0  ;;  %v252_v8 = vld [vmem:[%s2138_s3 + $0x78] sm:$0xff] }
 0x289   : > { %v1544_v3 = vpop.f32.mrf.mxu0 }
 0x28a   : > { %v686_v5 = vadd.f32 %v1544_v3, %v1961_v2  ;;  %v693_v22 = vmax.f32 %v671_v14, 0.0  ;;  %v245_v3 = vld [vmem:[%s2138_s3 + $0x40] sm:$0xff] }
 0x28b   : > { %v680_v7 = vpop.f32.mrf.mxu0 }
 0x28c   : > { %v696_v10 = vmax.f32 %v686_v5, 0.0  ;;  %v681_v11 = vadd.f32 %v680_v7, %v1968_v6 }
 0x28e   : > { %v695_v15 = vmax.f32 %v681_v11, 0.0  ;;  %1545 = vmatprep.subr.mxu1 %v696_v10  ;;  %v249_v11 = vld [vmem:[%s2138_s3 + $0x60] sm:$0xff] }
 0x28f   : > { %1546 = vmatpush3.msra.mxu1 %v696_v10  ;;  %v250_v10 = vld [vmem:[%s2138_s3 + $0x68] sm:$0xff] }
 0x290   : > { %1547 = vmatprep.subr.mxu1 %v695_v15 }
 0x291   : > { %1548 = vmatpush3.msra.mxu1 %v695_v15 }
 0x292   : > { %1549 = vmatprep.subr.mxu1 %v694_v18 }
 0x293   : > { %1550 = vmatpush3.msra.mxu1 %v694_v18  ;;  %v254_v18 = vld [vmem:[%s2138_s3 + $0x88] sm:$0xff] }
 0x294   : > { %1551 = vmatprep.subr.mxu1 %v693_v22 }
 0x295   : > { %1552 = vmatpush3.msra.mxu1 %v693_v22 }
 0x296   : > { %1553 = vmatprep.subr.mxu1 %v692_v25 }
 0x297   : > { %1554 = vmatpush3.msra.mxu1 %v692_v25  ;;  %v1749_v25 = vmov 0  }
 0x298   : > { %1555 = vmatprep.subr.mxu1 %v691_v27  ;;  %1677 = vset.pattern.permute.xlu0 %v1749_v25 }
 0x299   : > { %1556 = vmatpush3.msra.mxu1 %v691_v27  ;;  %1678 = vset.pattern.permute.xlu1 %v1749_v25 }
 0x29a   : > { %1557 = vmatprep.subr.mxu1 %v690_v28 }
 0x29b   : > { %1558 = vmatpush3.msra.mxu1 %v690_v28 }
 0x29c   : > { %1559 = vmatprep.subr.mxu1 %v689_v29 }
 0x29d   : > { %1560 = vmatpush3.msra.mxu1 %v689_v29 }
 0x29e   : > { %1562 = vmatmul.mubr.msk.f32.vlgmr.msra.gmra.mxu1 %vm429_vm2, %v1903_v42  ;;  %1593 = vmatprep.subr.mxu1 %v1747_v38 }
 0x29f   : > { %1564 = vmatprep.mubr.msk.f32.mxu1 %vm429_vm2, %v1906_v43 }
 0x2a2   : > { %1565 = vmatmul.mubr.msk.f32.gmra.mxu1 %vm429_vm2, %v1913_v44 }
 0x2a3   : > { %1567 = vmatprep.mubr.msk.f32.mxu1 %vm429_vm2, %v1916_v45 }
 0x2a6   : > { %1568 = vmatmul.mubr.msk.f32.gmra.mxu1 %vm429_vm2, %v1923_v46 }
 0x2a7   : > { %1570 = vmatprep.mubr.msk.f32.mxu1 %vm429_vm2, %v1926_v47 }
 0x2aa   : > { %1571 = vmatmul.mubr.msk.f32.gmra.mxu1 %vm429_vm2, %v1933_v48 }
 0x2ab   : > { %1609 = vmatprep.mubr.msk.f32.mxu1 %vm1748_vm4, %v1747_v38 }
 0x35e   : > { %v1563_v30 = vpop.f32.mrf.mxu1 }
 0x360   : > { %v763_v31 = vpop.f32.mrf.mxu1 }
 0x361   : > { %1581 = vmatprep.mubr.msk.f32.mxu0 %vm559_vm3, %v763_v31 }
 0x362   : > { %v1566_v32 = vpop.f32.mrf.mxu1  ;;  %1582 = vmatmul.mubr.msk.f32.vlgmr.msra.gmra.mxu0 %vm559_vm3, %v1563_v30 }
 0x363   : > { %1613 = vmatpush3.msra.mxu0 %v248_v39 }
 0x364   : > { %v773_v33 = vpop.f32.mrf.mxu1  ;;  %1614 = vmatprep.subr.mxu0 %v1747_v38 }
 0x365   : > { %1584 = vmatprep.mubr.msk.f32.mxu0 %vm559_vm3, %v773_v33  ;;  %1615 = vmatpush3.msra.mxu0 %v247_v40 }
 0x366   : > { %v1569_v34 = vpop.f32.mrf.mxu1  ;;  %1585 = vmatmul.mubr.msk.f32.gmra.mxu0 %vm559_vm3, %v1566_v32  ;;  %1616 = vmatprep.subr.mxu0 %v1747_v38 }
 0x367   : > { %1617 = vmatpush3.msra.mxu0 %v246_v41 }
 0x368   : > { %v783_v35 = vpop.f32.mrf.mxu1  ;;  %1618 = vmatprep.subr.mxu0 %v1747_v38 }
 0x369   : > { %1587 = vmatprep.mubr.msk.f32.mxu0 %vm559_vm3, %v783_v35  ;;  %1619 = vmatpush3.msra.mxu0 %v245_v3 }
 0x36a   : > { %v1572_v36 = vpop.f32.mrf.mxu1  ;;  %1588 = vmatmul.mubr.msk.f32.gmra.mxu0 %vm559_vm3, %v1569_v34 }
 0x36c   : > { %v793_v37 = vpop.f32.mrf.mxu1 }
 0x36d   : > { %1590 = vmatprep.mubr.msk.f32.mxu0 %vm559_vm3, %v793_v37  ;;  %v1184_v37 = vand.u32 127, %v271_v13 }
 0x36e   : > { %1591 = vmatmul.mubr.msk.f32.gmra.mxu0 %vm559_vm3, %v1572_v36 }
 0x36f   : > { %1620 = vmatprep.mubr.msk.f32.mxu0 %vm1748_vm4, %v1747_v38  ;;  %vm1220_vm10 = vcmp.eq.s32.totalorder %v1184_v37, 3  ;;  %vm1219_vm11 = vcmp.eq.s32.totalorder %v1184_v37, 2  ;;  %vm1228_vm12 = vcmp.eq.s32.totalorder %v1184_v37, 0  ;;  %vm1235_vm13 = vcmp.eq.s32.totalorder %v1184_v37, 1 }
 0x422   : > { %v1583_v42 = vpop.f32.mrf.mxu0 }
 0x423   : > { %v898_v60 = vadd.f32 %v1583_v42, %v1984_v20  ;;  %v1094_v20 = vrot.slane %v254_v18, %v1872_v19 }
 0x424   : > { %v892_v43 = vpop.f32.mrf.mxu0 }
 0x425   : > { %v893_v62 = vadd.f32 %v892_v43, %v1989_v24  ;;  %v932_v0 = vmax.f32 %v898_v60, 0.0 }
 0x426   : > { %v1586_v44 = vpop.f32.mrf.mxu0 }
 0x427   : > { %v908_v56 = vadd.f32 %v1586_v44, %v1976_v12  ;;  %v931_v1 = vmax.f32 %v893_v62, 0.0  ;;  %v1016_v12 = vrot.slane %v249_v11, %v1872_v19  ;;  %v1182_v19 = vld [vmem:[%s236_s20] sm:$0xff] }
 0x428   : > { %v902_v45 = vpop.f32.mrf.mxu0 }
 0x429   : > { %v903_v58 = vadd.f32 %v902_v45, %v1981_v17  ;;  %v934_v61 = vmax.f32 %v908_v56, 0.0 }
 0x42a   : > { %v1589_v46 = vpop.f32.mrf.mxu0 }
 0x42b   : > { %v918_v51 = vadd.f32 %v1589_v46, %v1964_v4  ;;  %v933_v63 = vmax.f32 %v903_v58, 0.0  ;;  %v253_v4 = vld [vmem:[%s2138_s3 + $0x80] sm:$0xff] }
 0x42c   : > { %v912_v47 = vpop.f32.mrf.mxu0 }
 0x42d   : > { %v913_v54 = vadd.f32 %v912_v47, %v1972_v9  ;;  %v936_v57 = vmax.f32 %v918_v51, 0.0  ;;  %v251_v9 = vld [vmem:[%s2138_s3 + $0x70] sm:$0xff]  ;;  %v1750_v51 = vmov 1  }
 0x42e   : > { %v1592_v48 = vpop.f32.mrf.mxu0 }
 0x42f   : > { %v928_v49 = vadd.f32 %v1592_v48, %v1961_v2  ;;  %v935_v59 = vmax.f32 %v913_v54, 0.0  ;;  %v237_v2 = vld [vmem:[%s2138_s3] sm:$0xff] }
 0x430   : > { %v922_v50 = vpop.f32.mrf.mxu0 }
 0x431   : > { %v938_v52 = vmax.f32 %v928_v49, 0.0  ;;  %v923_v53 = vadd.f32 %v922_v50, %v1968_v6 }
 0x433   : > { %v937_v55 = vmax.f32 %v923_v53, 0.0  ;;  %1594 = vmatpush3.msra.mxu1 %v938_v52 }
 0x434   : > { %1595 = vmatprep.subr.mxu1 %v1747_v38 }
 0x435   : > { %1596 = vmatpush3.msra.mxu1 %v937_v55 }
 0x436   : > { %1597 = vmatprep.subr.mxu1 %v1747_v38 }
 0x437   : > { %1598 = vmatpush3.msra.mxu1 %v936_v57 }
 0x438   : > { %1599 = vmatprep.subr.mxu1 %v1747_v38 }
 0x439   : > { %1600 = vmatpush3.msra.mxu1 %v935_v59 }
 0x43a   : > { %1601 = vmatprep.subr.mxu1 %v1747_v38 }
 0x43b   : > { %1602 = vmatpush3.msra.mxu1 %v934_v61 }
 0x43c   : > { %1603 = vmatprep.subr.mxu1 %v1747_v38 }
 0x43d   : > { %1604 = vmatpush3.msra.mxu1 %v933_v63 }
 0x43e   : > { %1605 = vmatprep.subr.mxu1 %v1747_v38 }
 0x43f   : > { %1606 = vmatpush3.msra.mxu1 %v932_v0 }
 0x440   : > { %1607 = vmatprep.subr.mxu1 %v1747_v38 }
 0x441   : > { %1608 = vmatpush3.msra.mxu1 %v931_v1 }
 0x442   : > { %1610 = vmatmul.mubr.msk.f32.vlgmr.msra.gmra.mxu1 %vm429_vm2, %v237_v2  ;;  %1623 = vmatprep.subr.mxu1 %v1747_v38 }
 0x443   : > { %1631 = vmatprep.mubr.msk.f32.mxu1 %vm1748_vm4, %v1747_v38  ;;  %1624 = vmatpush3.msra.mxu1 %v253_v4 }
 0x444   : > { %1625 = vmatprep.subr.mxu1 %v1747_v38 }
 0x445   : > { %1626 = vmatpush3.msra.mxu1 %v252_v8 }
 0x446   : > { %1627 = vmatprep.subr.mxu1 %v1747_v38 }
 0x447   : > { %1628 = vmatpush3.msra.mxu1 %v251_v9 }
 0x448   : > { %1629 = vmatprep.subr.mxu1 %v1747_v38 }
 0x449   : > { %1630 = vmatpush3.msra.mxu1 %v250_v10 }
 0x502   : > { %v1008_v5 = vpop.f32.mrf.mxu1 }
 0x503   : > { %v1012_v6 = vmax.f32 %v1008_v5, 0.0 }
 0x504   : > { %v1611_v7 = vpop.f32.mrf.mxu1 }
 0x505   : > { %1621 = vmatmul.mubr.msk.f32.vlgmr.msra.gmra.mxu0 %vm559_vm3, %v1012_v6 }
 0x5c5   : > { %v1086_v14 = vpop.f32.mrf.mxu0 }
 0x5c6   : > { %v1087_v15 = vadd.f32 %v1086_v14, %v1016_v12 }
 0x5c7   : > { %v1622_v16 = vpop.f32.mrf.mxu0 }
 0x5c8   : > { %v1090_v17 = vmax.f32 %v1087_v15, 0.0 }
 0x5ca   : > { %1632 = vmatmul.mubr.msk.f32.vlgmr.msra.gmra.mxu1 %vm559_vm3, %v1090_v17 }
 0x68a   : > { %v1164_v21 = vpop.f32.mrf.mxu1 }
 0x68b   : > { %v1165_v22 = vadd.f32 %v1164_v21, %v1094_v20 }
 0x68c   : > { %v1633_v23 = vpop.f32.mrf.mxu1 }
 0x68d   : > { %v1169_v24 = vsel %vm1168_vm5, %v1165_v22, -inf }
 0x68e   : > { %1170 = vmax.xlane.f32.xlu0 %v1169_v24 }
 0x717   : > { %v1171_v26 = vpop.xlane.xlu0 %1170 }
 0x718   : > { %v1172_v27 = vsub.f32 %v1165_v22, %v1171_v26 }
 0x71a   : > { %v1173_v28 = vmul.f32 1.442695, %v1172_v27 }
 0x71c   : > { %1681 = vpow2.f32 %v1173_v28 }
 0x729   : > { %v1682_v29 = vpop.eup %1681 }
 0x72a   : > { %v1175_v30 = vsel %vm1168_vm5, %v1682_v29, 0.0 }
 0x72b   : > { %1176 = vadd.xlane.f32.xlu0 %v1175_v30 }
 0x741   : > { %1186 = vperm.xlu0 %1677, %v1182_v19  }
 0x745   : > { %1680 = vset.pattern.permute.xlu0 %v1750_v51 }
 0x7b4   : > { %v1177_v31 = vpop.xlane.xlu0 %1176 }
 0x7b5   : > { %1683 = vlog2.f32 %v1177_v31 }
 0x7bc   : > { %v1187_v44 = vpop.permute.xlu0 %1186 }
 0x7bd   : > { %vm1188_vm7 = vcmp.eq.s32.totalorder %v1184_v37, %v1187_v44 }
 0x7be   : > { %v1393_v46 = vsel %vm1188_vm7, 1.0, %v1747_v38 }
 0x7c2   : > { %v1684_v32 = vpop.eup %1683 }
 0x7c3   : > { %v1179_v33 = vmul.f32 0.6931472, %v1684_v32 }
 0x7c5   : > { %v1180_v34 = vadd.f32 %v1179_v33, %v1171_v26 }
 0x7c7   : > { %v1181_v35 = vsub.f32 %v1165_v22, %v1180_v34 }
 0x7c9   : > { %v1196_v36 = vsel %vm1168_vm5, %v1181_v35, -inf  ;;  %v1191_v50 = vmul.f32 %v1393_v46, %v1181_v35 }
 0x7ca   : > { %1197 = vmax.xlane.f32.xlu1 %v1196_v36 }
 0x7cb   : > { %v1192_v13 = vsel %vm1168_vm5, %v1191_v50, 0.0 }
 0x853   : > { %v1198_v39 = vpop.xlane.xlu1 %1197 }
 0x854   : > { %vm1199_vm6 = vcmp.ge.f32.partialorder %v1181_v35, %v1198_v39 }
 0x855   : > { %v1200_v40 = vsel %vm1199_vm6, %v1184_v37, 2 }
 0x856   : > { %v1201_v41 = vsel %vm1168_vm5, %v1200_v40, 2147483647 }
 0x857   : > { %v1203_v42 = vshra.s32 %v1201_v41, 16  ;;  %v1202_v45 = vand.u32 65535, %v1201_v41 }
 0x859   : > { %v1205_v43 = vcvt.s32.f32 %v1203_v42  ;;  %v1204_v48 = vcvt.s32.f32 %v1202_v45 }
 0x85b   : > { %1206 = vmin.xlane.f32.xlu1 %v1205_v43 }
 0x8e4   : > { %v1207_v47 = vpop.xlane.xlu1 %1206 }
 0x8e5   : > { %vm1208_vm8 = vcmp.eq.f32.partialorder %v1205_v43, %v1207_v47  ;;  %v1213_v52 = vcvt.f32.s32 %v1207_v47 }
 0x8e6   : > { %v1209_v49 = vsel %vm1208_vm8, %v1204_v48, inf }
 0x8e7   : > { %1210 = vmin.xlane.f32.xlu1 %v1209_v49  ;;  %v1214_v54 = vshll.u32 %v1213_v52, 16 }
 0x8eb   : > { %1193 = vadd.xlane.f32.xlu1 %v1192_v13 }
 0x8fc   : > { %1231 = vperm.xlu1 %1678, %v1181_v35  }
 0x970   : > { %v1211_v53 = vpop.xlane.xlu1 %1210 }
 0x971   : > { %v1212_v55 = vcvt.f32.s32 %v1211_v53 }
 0x973   : > { %v1215_v56 = vadd.s32 %v1214_v54, %v1212_v55 }
 0x974   : > { %v1194_v58 = vpop.xlane.xlu1 %1193 }
 0x975   : > { %vm1216_vm9 = vcmp.eq.s32.totalorder %v1215_v56, %v1182_v19  ;;  %v1195_v60 = vsub.f32 0.0, %v1194_v58 }
 0x976   : > { %v1394_v57 = vsel %vm1216_vm9, 1.0, %v1747_v38 }
 0x977   : > { %1223 = vperm.xlu1 %1678, %v1394_v57  }
 0x978   : > { %v1232_v59 = vpop.permute.xlu1 %1231 }
 0x97b   : > { %1679 = vset.pattern.permute.xlu1 %v1750_v51 }
 0x97c   : > { %1237 = vperm.xlu1 %1679, %v1181_v35  }
 0x9f2   : > { %v1224_v61 = vpop.permute.xlu1 %1223 }
 0x9f3   : > { %v1226_v62 = vsel %vm1220_vm10, %v1224_v61, 0.0 }
 0x9f4   : > { %v1227_v63 = vsel %vm1219_vm11, %v1195_v60, %v1226_v62 }
 0x9f5   : > { %v1234_v38 = vsel %vm1228_vm12, %v1232_v59, %v1227_v63 }
 0x9f7   : > { %v1238_v0 = vpop.permute.xlu1 %1237 }
 0x9f8   : > { %v1240_v1 = vsel %vm1235_vm13, %v1238_v0, %v1234_v38 }
 0x9f9   : > { %1241 = vst [vmem:[%s220_s28] sm:$0xff] %v1240_v1 }
 0x9fa   : > { %1698 = shalt.err (!%p1695_p4)
}
 0x9fb   : > { %s1699_s11 = scalar_lea.hbm %s2100_s6, 128  ;;  %s1703_s14 = scalar_lea.hbm %s2139_s4, 256 }
 0x9fc   : > { %p1700_p7 = scmp.ne.s32.totalorder %s2100_s6, %s1699_s11  ;;  %p1704_p10 = scmp.lt.s32.totalorder %s2100_s6, %s2139_s4 }
 0x9fd   : > { %p1705_p11 = scmp.lt.s32.totalorder %s1703_s14, %s1699_s11 }
 0x9fe   : > { %p1701_p8 = pnand %p1700_p7, %p1815_p5 }
 0x9ff   : > { %p1706_p12 = por %p1705_p11, %p1704_p10 }
 0xa00   : > { %p1702_p9 = pneg %p1701_p8 }
 0xa02   : > { %p1707_p13 = pnand %p1706_p12, %p1702_p9 }
 0xa04   : > { %1710 = shalt.err (!%p1707_p13)
}
 0xa05   : > { %1634 = dma.vmem_to_hbm [thread:$0]  (%p1815_p5), %s1257_s29, 128, %s2100_s6, %s1243_s7  }
 0xa06 PF: > { %p1640_p0 = scmp.ge.s32.totalorder %s1745_s18, 2  ;;  %s1268_s23 = sand.u32 1, %s1733_s15  }
 0xa07   : > { %s1269_s27 = scalar_lea.sflag [#allocation3], %s1268_s23 }
 0xa08   : > { %p1637_p1 = pnand %p1640_p0, %p1819_p6 }
 0xa0a   : > { %p1638_p2 = pneg %p1637_p1 }
 0xa0c   : > { %1728 = dma.done.wait (%p1638_p2), %s1269_s27, 128  }
 0xa0d   : > { %1730 = vsyncadd (%p1638_p2), %s1269_s27, 4294967168  ;;  %p14_p3 = scmp.ge.s32.totalorder %s1802_s21, 4   ;;  %s2142_s15 = smov %s1737_s16 }
 0xa0e   : > { %s2143_s16 = smov %s1741_s17  ;;  %s2144_s17 = smov %s1813_s24 }
 0xa0f   : > { %s2145_s18 = smov %s1802_s21  ;;  %16 = sbr.rel (!%p14_p3) target bundleno = 3 (0x3), region = 77 }
 0xa14   :  { %1274 = vsyncpa [#allocation3], 1 }
 0xa15   :  { %1276 = vsyncpa [#allocation3 + $0x1], 1 }

</bundles_post_ra>
